<compile_context>
chip_gen: v7x
topology: tpu7x:2x2x1
jax: 0.10.0
libtpu: 0.0.40
codegen_flags: <defaults>
</compile_context>

<pallas_src>
import functools

import jax
import jax.numpy as jnp
from jax.experimental import pallas as pl
from jax.experimental.pallas import tpu as pltpu

_LANES = 128  # pixels per lane-row


def _round_up(v, m):
    return ((v + m - 1) // m) * m


def _guide_kernel(p_ref, x_ref, o_ref, *, C):
    # p_ref : SMEM (5*C + 1,) f32, packed as
    #         [ w1_scaled (C*3, row-major c-k) | shift (C) | w2 (C) | b2 ]
    # x_ref : VMEM (3, tr, 128)  -- three channel slabs, pixels lane-dense
    # o_ref : VMEM (tr, 128)     -- guide map tile, pixels lane-dense
    x0 = x_ref[0]
    x1 = x_ref[1]
    x2 = x_ref[2]

    acc = jnp.zeros_like(x0)
    # Per-pixel MLP on the VPU with scalar-broadcast weights (no MXU).
    for c in range(C):
        h = (p_ref[3 * c + 0] * x0
             + p_ref[3 * c + 1] * x1
             + p_ref[3 * c + 2] * x2
             + p_ref[3 * C + c])            # folded BN shift (+ conv1 bias)
        h = jnp.maximum(h, 0.0)             # ReLU
        acc = acc + p_ref[4 * C + c] * h    # conv2 1x1

    y = acc + p_ref[5 * C]                  # conv2 bias
    # sigmoid(y) = 1 / (1 + exp(-y)); exp + approx reciprocal both run on EUP.
    o_ref[...] = pl.reciprocal(1.0 + jnp.exp(-y), approx=True)


def guide_nn_forward(x_nchw, params, *, pixels_per_tile=32768):
    """x_nchw: (N, 3, H, W) float32 -> (N, 1, H, W) float32."""
    w1 = params["w1"]              # (C, 3)  conv1 weight (1x1, squeezed)
    b1 = params["b1"]              # (C,)
    gamma = params["gamma"]        # (C,)
    beta = params["beta"]          # (C,)
    mean = params["running_mean"]  # (C,)
    var = params["running_var"]    # (C,)
    w2 = params["w2"]              # (1, C)  conv2 weight
    b2 = params["b2"]              # (1,)
    eps = 1e-5

    N, Cin, H, W = x_nchw.shape
    assert Cin == 3, "GuideNN takes a 3-channel image"
    C = w1.shape[0]

    # Fold conv1 bias + BN (inference form) into the conv1 weight and a shift.
    scale = gamma * jax.lax.rsqrt(var + eps)          # (C,)
    w1_scaled = w1 * scale[:, None]                   # (C, 3)
    shift = (b1 - mean) * scale + beta                # (C,)
    packed = jnp.concatenate(
        [w1_scaled.reshape(-1), shift, w2.reshape(-1), b2.reshape(-1)]
    ).astype(jnp.float32)                             # (5*C + 1,)

    # Pixel tiling: pixels -> (rows of 128 lanes); tile tr rows per grid step.
    HW = H * W
    rows = pl.cdiv(HW, _LANES)
    tr = min(max(pixels_per_tile // _LANES, 1), rows)
    tr = max(8, _round_up(tr, 8))                     # sublane-aligned tile
    n_tiles = pl.cdiv(rows, tr)
    rows_pad = n_tiles * tr
    hw_pad = rows_pad * _LANES

    # NCHW is already channel-planar: only reshapes (and an optional pad) --
    # no HBM-round-trip transposes.
    x_flat = x_nchw.reshape(N, Cin, HW).astype(jnp.float32)
    if hw_pad != HW:
        x_flat = jnp.pad(x_flat, ((0, 0), (0, 0), (0, hw_pad - HW)))
    x_r = x_flat.reshape(N, Cin, rows_pad, _LANES)

    kernel = functools.partial(_guide_kernel, C=C)

    out_r = pl.pallas_call(
        kernel,
        out_shape=jax.ShapeDtypeStruct((N, rows_pad, _LANES), jnp.float32),
        grid_spec=pltpu.PrefetchScalarGridSpec(
            num_scalar_prefetch=1,                    # `packed` -> SMEM
            grid=(N, n_tiles),
            in_specs=[
                pl.BlockSpec((None, Cin, tr, _LANES),
                             lambda n, i, p: (n, 0, i, 0)),
            ],
            out_specs=pl.BlockSpec((None, tr, _LANES),
                                   lambda n, i, p: (n, i, 0)),
        ),
        compiler_params=pltpu.CompilerParams(
            dimension_semantics=("parallel", "parallel")),
    )(packed, x_r)

    out = out_r.reshape(N, hw_pad)
    if hw_pad != HW:
        out = out[:, :HW]
    return out.reshape(N, 1, H, W)


def _reference_forward(x_nchw, params):
    """Pure-JAX reference (same math, NCHW) for a correctness check."""
    w1, b1 = params["w1"], params["b1"]
    gamma, beta = params["gamma"], params["beta"]
    mean, var = params["running_mean"], params["running_var"]
    w2, b2 = params["w2"], params["b2"]
    eps = 1e-5
    y = jnp.einsum("nchw,oc->nohw", x_nchw, w1) + b1[None, :, None, None]
    y = (y - mean[None, :, None, None]) / jnp.sqrt(var[None, :, None, None] + eps)
    y = y * gamma[None, :, None, None] + beta[None, :, None, None]
    y = jnp.maximum(y, 0.0)
    z = jnp.einsum("nchw,oc->nohw", y, w2) + b2[None, :, None, None]
    return 1.0 / (1.0 + jnp.exp(-z))


if __name__ == "__main__":
    key = jax.random.PRNGKey(0)
    N, Cin, H, W = 2, 3, 16, 16
    C = 16  # params.HDRNET.GUIDE_COMPLEXITY

    keys = jax.random.split(key, 8)
    # Deterministic synthetic parameters (kaiming-ish uniform weights,
    # conv2 bias zero as in the module's __init__).
    params = {
        "w1": jax.random.uniform(keys[0], (C, Cin), jnp.float32, -1.0, 1.0),
        "b1": jax.random.uniform(keys[1], (C,), jnp.float32, -0.1, 0.1),
        "gamma": jax.random.uniform(keys[2], (C,), jnp.float32, 0.5, 1.5),
        "beta": jax.random.uniform(keys[3], (C,), jnp.float32, -0.1, 0.1),
        "running_mean": jax.random.uniform(keys[4], (C,), jnp.float32, -0.5, 0.5),
        "running_var": jax.random.uniform(keys[5], (C,), jnp.float32, 0.5, 1.5),
        "w2": jax.random.uniform(keys[6], (1, C), jnp.float32, -1.0, 1.0),
        "b2": jnp.zeros((1,), jnp.float32),
    }

    x = jax.random.normal(keys[7], (N, Cin, H, W), jnp.float32)

    out = guide_nn_forward(x, params)
    out = jax.block_until_ready(out)

    ref = _reference_forward(x, params)
    assert out.shape == (N, 1, H, W)
    # Tolerance is set by the EUP approximate reciprocal in the sigmoid
    # (~1e-4 abs on a [0,1]-bounded output); everything else is exact f32.
    assert jnp.allclose(out, ref, atol=2e-3, rtol=2e-3), (
        float(jnp.max(jnp.abs(out - ref))))

    print("KERNEL_OK")
</pallas_src>

<mosaic_0001>
module attributes {stable_mosaic.version = 11 : i64} {
  func.func @_guide_kernel(%arg0: i32, %arg1: i32, %arg2: memref<81xf32, #tpu.memory_space<smem>>, %arg3: memref<1x3x8x128xf32, #tpu.memory_space<vmem>>, %arg4: memref<1x8x128xf32, #tpu.memory_space<vmem>>) attributes {dimension_semantics = [#tpu.dimension_semantics<parallel>, #tpu.dimension_semantics<parallel>], iteration_bounds = array<i64: 2, 1>, scalar_prefetch = 1 : i64, scratch_operands = 0 : i64, tpu.core_type = #tpu.core_type<tc>, window_params = [{transform_indices = @transform_0, window_bounds = array<i64: 1, 3, 8, 128>}, {transform_indices = @transform_1, window_bounds = array<i64: 1, 8, 128>}]} {
    %c0 = arith.constant 0 : index
    %c0_0 = arith.constant 0 : index
    %c0_1 = arith.constant 0 : index
    %c0_2 = arith.constant 0 : index
    %0 = vector.load %arg3[%c0, %c0_0, %c0_1, %c0_2] : memref<1x3x8x128xf32, #tpu.memory_space<vmem>>, vector<1x1x8x128xf32>
    %1 = vector.shape_cast %0 : vector<1x1x8x128xf32> to vector<8x128xf32>
    %c0_3 = arith.constant 0 : index
    %c1 = arith.constant 1 : index
    %c0_4 = arith.constant 0 : index
    %c0_5 = arith.constant 0 : index
    %2 = vector.load %arg3[%c0_3, %c1, %c0_4, %c0_5] : memref<1x3x8x128xf32, #tpu.memory_space<vmem>>, vector<1x1x8x128xf32>
    %3 = vector.shape_cast %2 : vector<1x1x8x128xf32> to vector<8x128xf32>
    %c0_6 = arith.constant 0 : index
    %c2 = arith.constant 2 : index
    %c0_7 = arith.constant 0 : index
    %c0_8 = arith.constant 0 : index
    %4 = vector.load %arg3[%c0_6, %c2, %c0_7, %c0_8] : memref<1x3x8x128xf32, #tpu.memory_space<vmem>>, vector<1x1x8x128xf32>
    %5 = vector.shape_cast %4 : vector<1x1x8x128xf32> to vector<8x128xf32>
    %cst = arith.constant 0.000000e+00 : f32
    %6 = vector.broadcast %cst : f32 to vector<8x128xf32>
    %c0_9 = arith.constant 0 : index
    %7 = memref.load %arg2[%c0_9] : memref<81xf32, #tpu.memory_space<smem>>
    %8 = vector.broadcast %7 : f32 to vector<8x128xf32>
    %9 = arith.mulf %8, %1 : vector<8x128xf32>
    %c1_10 = arith.constant 1 : index
    %10 = memref.load %arg2[%c1_10] : memref<81xf32, #tpu.memory_space<smem>>
    %11 = vector.broadcast %10 : f32 to vector<8x128xf32>
    %12 = arith.mulf %11, %3 : vector<8x128xf32>
    %13 = arith.addf %9, %12 : vector<8x128xf32>
    %c2_11 = arith.constant 2 : index
    %14 = memref.load %arg2[%c2_11] : memref<81xf32, #tpu.memory_space<smem>>
    %15 = vector.broadcast %14 : f32 to vector<8x128xf32>
    %16 = arith.mulf %15, %5 : vector<8x128xf32>
    %17 = arith.addf %13, %16 : vector<8x128xf32>
    %c48 = arith.constant 48 : index
    %18 = memref.load %arg2[%c48] : memref<81xf32, #tpu.memory_space<smem>>
    %19 = vector.broadcast %18 : f32 to vector<8x128xf32>
    %20 = arith.addf %17, %19 : vector<8x128xf32>
    %cst_12 = arith.constant 0.000000e+00 : f32
    %21 = vector.broadcast %cst_12 : f32 to vector<8x128xf32>
    %22 = arith.maximumf %20, %21 : vector<8x128xf32>
    %c64 = arith.constant 64 : index
    %23 = memref.load %arg2[%c64] : memref<81xf32, #tpu.memory_space<smem>>
    %24 = vector.broadcast %23 : f32 to vector<8x128xf32>
    %25 = arith.mulf %24, %22 : vector<8x128xf32>
    %26 = arith.addf %6, %25 : vector<8x128xf32>
    %c3 = arith.constant 3 : index
    %27 = memref.load %arg2[%c3] : memref<81xf32, #tpu.memory_space<smem>>
    %28 = vector.broadcast %27 : f32 to vector<8x128xf32>
    %29 = arith.mulf %28, %1 : vector<8x128xf32>
    %c4 = arith.constant 4 : index
    %30 = memref.load %arg2[%c4] : memref<81xf32, #tpu.memory_space<smem>>
    %31 = vector.broadcast %30 : f32 to vector<8x128xf32>
    %32 = arith.mulf %31, %3 : vector<8x128xf32>
    %33 = arith.addf %29, %32 : vector<8x128xf32>
    %c5 = arith.constant 5 : index
    %34 = memref.load %arg2[%c5] : memref<81xf32, #tpu.memory_space<smem>>
    %35 = vector.broadcast %34 : f32 to vector<8x128xf32>
    %36 = arith.mulf %35, %5 : vector<8x128xf32>
    %37 = arith.addf %33, %36 : vector<8x128xf32>
    %c49 = arith.constant 49 : index
    %38 = memref.load %arg2[%c49] : memref<81xf32, #tpu.memory_space<smem>>
    %39 = vector.broadcast %38 : f32 to vector<8x128xf32>
    %40 = arith.addf %37, %39 : vector<8x128xf32>
    %cst_13 = arith.constant 0.000000e+00 : f32
    %41 = vector.broadcast %cst_13 : f32 to vector<8x128xf32>
    %42 = arith.maximumf %40, %41 : vector<8x128xf32>
    %c65 = arith.constant 65 : index
    %43 = memref.load %arg2[%c65] : memref<81xf32, #tpu.memory_space<smem>>
    %44 = vector.broadcast %43 : f32 to vector<8x128xf32>
    %45 = arith.mulf %44, %42 : vector<8x128xf32>
    %46 = arith.addf %26, %45 : vector<8x128xf32>
    %c6 = arith.constant 6 : index
    %47 = memref.load %arg2[%c6] : memref<81xf32, #tpu.memory_space<smem>>
    %48 = vector.broadcast %47 : f32 to vector<8x128xf32>
    %49 = arith.mulf %48, %1 : vector<8x128xf32>
    %c7 = arith.constant 7 : index
    %50 = memref.load %arg2[%c7] : memref<81xf32, #tpu.memory_space<smem>>
    %51 = vector.broadcast %50 : f32 to vector<8x128xf32>
    %52 = arith.mulf %51, %3 : vector<8x128xf32>
    %53 = arith.addf %49, %52 : vector<8x128xf32>
    %c8 = arith.constant 8 : index
    %54 = memref.load %arg2[%c8] : memref<81xf32, #tpu.memory_space<smem>>
    %55 = vector.broadcast %54 : f32 to vector<8x128xf32>
    %56 = arith.mulf %55, %5 : vector<8x128xf32>
    %57 = arith.addf %53, %56 : vector<8x128xf32>
    %c50 = arith.constant 50 : index
    %58 = memref.load %arg2[%c50] : memref<81xf32, #tpu.memory_space<smem>>
    %59 = vector.broadcast %58 : f32 to vector<8x128xf32>
    %60 = arith.addf %57, %59 : vector<8x128xf32>
    %cst_14 = arith.constant 0.000000e+00 : f32
    %61 = vector.broadcast %cst_14 : f32 to vector<8x128xf32>
    %62 = arith.maximumf %60, %61 : vector<8x128xf32>
    %c66 = arith.constant 66 : index
    %63 = memref.load %arg2[%c66] : memref<81xf32, #tpu.memory_space<smem>>
    %64 = vector.broadcast %63 : f32 to vector<8x128xf32>
    %65 = arith.mulf %64, %62 : vector<8x128xf32>
    %66 = arith.addf %46, %65 : vector<8x128xf32>
    %c9 = arith.constant 9 : index
    %67 = memref.load %arg2[%c9] : memref<81xf32, #tpu.memory_space<smem>>
    %68 = vector.broadcast %67 : f32 to vector<8x128xf32>
    %69 = arith.mulf %68, %1 : vector<8x128xf32>
    %c10 = arith.constant 10 : index
    %70 = memref.load %arg2[%c10] : memref<81xf32, #tpu.memory_space<smem>>
    %71 = vector.broadcast %70 : f32 to vector<8x128xf32>
    %72 = arith.mulf %71, %3 : vector<8x128xf32>
    %73 = arith.addf %69, %72 : vector<8x128xf32>
    %c11 = arith.constant 11 : index
    %74 = memref.load %arg2[%c11] : memref<81xf32, #tpu.memory_space<smem>>
    %75 = vector.broadcast %74 : f32 to vector<8x128xf32>
    %76 = arith.mulf %75, %5 : vector<8x128xf32>
    %77 = arith.addf %73, %76 : vector<8x128xf32>
    %c51 = arith.constant 51 : index
    %78 = memref.load %arg2[%c51] : memref<81xf32, #tpu.memory_space<smem>>
    %79 = vector.broadcast %78 : f32 to vector<8x128xf32>
    %80 = arith.addf %77, %79 : vector<8x128xf32>
    %cst_15 = arith.constant 0.000000e+00 : f32
    %81 = vector.broadcast %cst_15 : f32 to vector<8x128xf32>
    %82 = arith.maximumf %80, %81 : vector<8x128xf32>
    %c67 = arith.constant 67 : index
    %83 = memref.load %arg2[%c67] : memref<81xf32, #tpu.memory_space<smem>>
    %84 = vector.broadcast %83 : f32 to vector<8x128xf32>
    %85 = arith.mulf %84, %82 : vector<8x128xf32>
    %86 = arith.addf %66, %85 : vector<8x128xf32>
    %c12 = arith.constant 12 : index
    %87 = memref.load %arg2[%c12] : memref<81xf32, #tpu.memory_space<smem>>
    %88 = vector.broadcast %87 : f32 to vector<8x128xf32>
    %89 = arith.mulf %88, %1 : vector<8x128xf32>
    %c13 = arith.constant 13 : index
    %90 = memref.load %arg2[%c13] : memref<81xf32, #tpu.memory_space<smem>>
    %91 = vector.broadcast %90 : f32 to vector<8x128xf32>
    %92 = arith.mulf %91, %3 : vector<8x128xf32>
    %93 = arith.addf %89, %92 : vector<8x128xf32>
    %c14 = arith.constant 14 : index
    %94 = memref.load %arg2[%c14] : memref<81xf32, #tpu.memory_space<smem>>
    %95 = vector.broadcast %94 : f32 to vector<8x128xf32>
    %96 = arith.mulf %95, %5 : vector<8x128xf32>
    %97 = arith.addf %93, %96 : vector<8x128xf32>
    %c52 = arith.constant 52 : index
    %98 = memref.load %arg2[%c52] : memref<81xf32, #tpu.memory_space<smem>>
    %99 = vector.broadcast %98 : f32 to vector<8x128xf32>
    %100 = arith.addf %97, %99 : vector<8x128xf32>
    %cst_16 = arith.constant 0.000000e+00 : f32
    %101 = vector.broadcast %cst_16 : f32 to vector<8x128xf32>
    %102 = arith.maximumf %100, %101 : vector<8x128xf32>
    %c68 = arith.constant 68 : index
    %103 = memref.load %arg2[%c68] : memref<81xf32, #tpu.memory_space<smem>>
    %104 = vector.broadcast %103 : f32 to vector<8x128xf32>
    %105 = arith.mulf %104, %102 : vector<8x128xf32>
    %106 = arith.addf %86, %105 : vector<8x128xf32>
    %c15 = arith.constant 15 : index
    %107 = memref.load %arg2[%c15] : memref<81xf32, #tpu.memory_space<smem>>
    %108 = vector.broadcast %107 : f32 to vector<8x128xf32>
    %109 = arith.mulf %108, %1 : vector<8x128xf32>
    %c16 = arith.constant 16 : index
    %110 = memref.load %arg2[%c16] : memref<81xf32, #tpu.memory_space<smem>>
    %111 = vector.broadcast %110 : f32 to vector<8x128xf32>
    %112 = arith.mulf %111, %3 : vector<8x128xf32>
    %113 = arith.addf %109, %112 : vector<8x128xf32>
    %c17 = arith.constant 17 : index
    %114 = memref.load %arg2[%c17] : memref<81xf32, #tpu.memory_space<smem>>
    %115 = vector.broadcast %114 : f32 to vector<8x128xf32>
    %116 = arith.mulf %115, %5 : vector<8x128xf32>
    %117 = arith.addf %113, %116 : vector<8x128xf32>
    %c53 = arith.constant 53 : index
    %118 = memref.load %arg2[%c53] : memref<81xf32, #tpu.memory_space<smem>>
    %119 = vector.broadcast %118 : f32 to vector<8x128xf32>
    %120 = arith.addf %117, %119 : vector<8x128xf32>
    %cst_17 = arith.constant 0.000000e+00 : f32
    %121 = vector.broadcast %cst_17 : f32 to vector<8x128xf32>
    %122 = arith.maximumf %120, %121 : vector<8x128xf32>
    %c69 = arith.constant 69 : index
    %123 = memref.load %arg2[%c69] : memref<81xf32, #tpu.memory_space<smem>>
    %124 = vector.broadcast %123 : f32 to vector<8x128xf32>
    %125 = arith.mulf %124, %122 : vector<8x128xf32>
    %126 = arith.addf %106, %125 : vector<8x128xf32>
    %c18 = arith.constant 18 : index
    %127 = memref.load %arg2[%c18] : memref<81xf32, #tpu.memory_space<smem>>
    %128 = vector.broadcast %127 : f32 to vector<8x128xf32>
    %129 = arith.mulf %128, %1 : vector<8x128xf32>
    %c19 = arith.constant 19 : index
    %130 = memref.load %arg2[%c19] : memref<81xf32, #tpu.memory_space<smem>>
    %131 = vector.broadcast %130 : f32 to vector<8x128xf32>
    %132 = arith.mulf %131, %3 : vector<8x128xf32>
    %133 = arith.addf %129, %132 : vector<8x128xf32>
    %c20 = arith.constant 20 : index
    %134 = memref.load %arg2[%c20] : memref<81xf32, #tpu.memory_space<smem>>
    %135 = vector.broadcast %134 : f32 to vector<8x128xf32>
    %136 = arith.mulf %135, %5 : vector<8x128xf32>
    %137 = arith.addf %133, %136 : vector<8x128xf32>
    %c54 = arith.constant 54 : index
    %138 = memref.load %arg2[%c54] : memref<81xf32, #tpu.memory_space<smem>>
    %139 = vector.broadcast %138 : f32 to vector<8x128xf32>
    %140 = arith.addf %137, %139 : vector<8x128xf32>
    %cst_18 = arith.constant 0.000000e+00 : f32
    %141 = vector.broadcast %cst_18 : f32 to vector<8x128xf32>
    %142 = arith.maximumf %140, %141 : vector<8x128xf32>
    %c70 = arith.constant 70 : index
    %143 = memref.load %arg2[%c70] : memref<81xf32, #tpu.memory_space<smem>>
    %144 = vector.broadcast %143 : f32 to vector<8x128xf32>
    %145 = arith.mulf %144, %142 : vector<8x128xf32>
    %146 = arith.addf %126, %145 : vector<8x128xf32>
    %c21 = arith.constant 21 : index
    %147 = memref.load %arg2[%c21] : memref<81xf32, #tpu.memory_space<smem>>
    %148 = vector.broadcast %147 : f32 to vector<8x128xf32>
    %149 = arith.mulf %148, %1 : vector<8x128xf32>
    %c22 = arith.constant 22 : index
    %150 = memref.load %arg2[%c22] : memref<81xf32, #tpu.memory_space<smem>>
    %151 = vector.broadcast %150 : f32 to vector<8x128xf32>
    %152 = arith.mulf %151, %3 : vector<8x128xf32>
    %153 = arith.addf %149, %152 : vector<8x128xf32>
    %c23 = arith.constant 23 : index
    %154 = memref.load %arg2[%c23] : memref<81xf32, #tpu.memory_space<smem>>
    %155 = vector.broadcast %154 : f32 to vector<8x128xf32>
    %156 = arith.mulf %155, %5 : vector<8x128xf32>
    %157 = arith.addf %153, %156 : vector<8x128xf32>
    %c55 = arith.constant 55 : index
    %158 = memref.load %arg2[%c55] : memref<81xf32, #tpu.memory_space<smem>>
    %159 = vector.broadcast %158 : f32 to vector<8x128xf32>
    %160 = arith.addf %157, %159 : vector<8x128xf32>
    %cst_19 = arith.constant 0.000000e+00 : f32
    %161 = vector.broadcast %cst_19 : f32 to vector<8x128xf32>
    %162 = arith.maximumf %160, %161 : vector<8x128xf32>
    %c71 = arith.constant 71 : index
    %163 = memref.load %arg2[%c71] : memref<81xf32, #tpu.memory_space<smem>>
    %164 = vector.broadcast %163 : f32 to vector<8x128xf32>
    %165 = arith.mulf %164, %162 : vector<8x128xf32>
    %166 = arith.addf %146, %165 : vector<8x128xf32>
    %c24 = arith.constant 24 : index
    %167 = memref.load %arg2[%c24] : memref<81xf32, #tpu.memory_space<smem>>
    %168 = vector.broadcast %167 : f32 to vector<8x128xf32>
    %169 = arith.mulf %168, %1 : vector<8x128xf32>
    %c25 = arith.constant 25 : index
    %170 = memref.load %arg2[%c25] : memref<81xf32, #tpu.memory_space<smem>>
    %171 = vector.broadcast %170 : f32 to vector<8x128xf32>
    %172 = arith.mulf %171, %3 : vector<8x128xf32>
    %173 = arith.addf %169, %172 : vector<8x128xf32>
    %c26 = arith.constant 26 : index
    %174 = memref.load %arg2[%c26] : memref<81xf32, #tpu.memory_space<smem>>
    %175 = vector.broadcast %174 : f32 to vector<8x128xf32>
    %176 = arith.mulf %175, %5 : vector<8x128xf32>
    %177 = arith.addf %173, %176 : vector<8x128xf32>
    %c56 = arith.constant 56 : index
    %178 = memref.load %arg2[%c56] : memref<81xf32, #tpu.memory_space<smem>>
    %179 = vector.broadcast %178 : f32 to vector<8x128xf32>
    %180 = arith.addf %177, %179 : vector<8x128xf32>
    %cst_20 = arith.constant 0.000000e+00 : f32
    %181 = vector.broadcast %cst_20 : f32 to vector<8x128xf32>
    %182 = arith.maximumf %180, %181 : vector<8x128xf32>
    %c72 = arith.constant 72 : index
    %183 = memref.load %arg2[%c72] : memref<81xf32, #tpu.memory_space<smem>>
    %184 = vector.broadcast %183 : f32 to vector<8x128xf32>
    %185 = arith.mulf %184, %182 : vector<8x128xf32>
    %186 = arith.addf %166, %185 : vector<8x128xf32>
    %c27 = arith.constant 27 : index
    %187 = memref.load %arg2[%c27] : memref<81xf32, #tpu.memory_space<smem>>
    %188 = vector.broadcast %187 : f32 to vector<8x128xf32>
    %189 = arith.mulf %188, %1 : vector<8x128xf32>
    %c28 = arith.constant 28 : index
    %190 = memref.load %arg2[%c28] : memref<81xf32, #tpu.memory_space<smem>>
    %191 = vector.broadcast %190 : f32 to vector<8x128xf32>
    %192 = arith.mulf %191, %3 : vector<8x128xf32>
    %193 = arith.addf %189, %192 : vector<8x128xf32>
    %c29 = arith.constant 29 : index
    %194 = memref.load %arg2[%c29] : memref<81xf32, #tpu.memory_space<smem>>
    %195 = vector.broadcast %194 : f32 to vector<8x128xf32>
    %196 = arith.mulf %195, %5 : vector<8x128xf32>
    %197 = arith.addf %193, %196 : vector<8x128xf32>
    %c57 = arith.constant 57 : index
    %198 = memref.load %arg2[%c57] : memref<81xf32, #tpu.memory_space<smem>>
    %199 = vector.broadcast %198 : f32 to vector<8x128xf32>
    %200 = arith.addf %197, %199 : vector<8x128xf32>
    %cst_21 = arith.constant 0.000000e+00 : f32
    %201 = vector.broadcast %cst_21 : f32 to vector<8x128xf32>
    %202 = arith.maximumf %200, %201 : vector<8x128xf32>
    %c73 = arith.constant 73 : index
    %203 = memref.load %arg2[%c73] : memref<81xf32, #tpu.memory_space<smem>>
    %204 = vector.broadcast %203 : f32 to vector<8x128xf32>
    %205 = arith.mulf %204, %202 : vector<8x128xf32>
    %206 = arith.addf %186, %205 : vector<8x128xf32>
    %c30 = arith.constant 30 : index
    %207 = memref.load %arg2[%c30] : memref<81xf32, #tpu.memory_space<smem>>
    %208 = vector.broadcast %207 : f32 to vector<8x128xf32>
    %209 = arith.mulf %208, %1 : vector<8x128xf32>
    %c31 = arith.constant 31 : index
    %210 = memref.load %arg2[%c31] : memref<81xf32, #tpu.memory_space<smem>>
    %211 = vector.broadcast %210 : f32 to vector<8x128xf32>
    %212 = arith.mulf %211, %3 : vector<8x128xf32>
    %213 = arith.addf %209, %212 : vector<8x128xf32>
    %c32 = arith.constant 32 : index
    %214 = memref.load %arg2[%c32] : memref<81xf32, #tpu.memory_space<smem>>
    %215 = vector.broadcast %214 : f32 to vector<8x128xf32>
    %216 = arith.mulf %215, %5 : vector<8x128xf32>
    %217 = arith.addf %213, %216 : vector<8x128xf32>
    %c58 = arith.constant 58 : index
    %218 = memref.load %arg2[%c58] : memref<81xf32, #tpu.memory_space<smem>>
    %219 = vector.broadcast %218 : f32 to vector<8x128xf32>
    %220 = arith.addf %217, %219 : vector<8x128xf32>
    %cst_22 = arith.constant 0.000000e+00 : f32
    %221 = vector.broadcast %cst_22 : f32 to vector<8x128xf32>
    %222 = arith.maximumf %220, %221 : vector<8x128xf32>
    %c74 = arith.constant 74 : index
    %223 = memref.load %arg2[%c74] : memref<81xf32, #tpu.memory_space<smem>>
    %224 = vector.broadcast %223 : f32 to vector<8x128xf32>
    %225 = arith.mulf %224, %222 : vector<8x128xf32>
    %226 = arith.addf %206, %225 : vector<8x128xf32>
    %c33 = arith.constant 33 : index
    %227 = memref.load %arg2[%c33] : memref<81xf32, #tpu.memory_space<smem>>
    %228 = vector.broadcast %227 : f32 to vector<8x128xf32>
    %229 = arith.mulf %228, %1 : vector<8x128xf32>
    %c34 = arith.constant 34 : index
    %230 = memref.load %arg2[%c34] : memref<81xf32, #tpu.memory_space<smem>>
    %231 = vector.broadcast %230 : f32 to vector<8x128xf32>
    %232 = arith.mulf %231, %3 : vector<8x128xf32>
    %233 = arith.addf %229, %232 : vector<8x128xf32>
    %c35 = arith.constant 35 : index
    %234 = memref.load %arg2[%c35] : memref<81xf32, #tpu.memory_space<smem>>
    %235 = vector.broadcast %234 : f32 to vector<8x128xf32>
    %236 = arith.mulf %235, %5 : vector<8x128xf32>
    %237 = arith.addf %233, %236 : vector<8x128xf32>
    %c59 = arith.constant 59 : index
    %238 = memref.load %arg2[%c59] : memref<81xf32, #tpu.memory_space<smem>>
    %239 = vector.broadcast %238 : f32 to vector<8x128xf32>
    %240 = arith.addf %237, %239 : vector<8x128xf32>
    %cst_23 = arith.constant 0.000000e+00 : f32
    %241 = vector.broadcast %cst_23 : f32 to vector<8x128xf32>
    %242 = arith.maximumf %240, %241 : vector<8x128xf32>
    %c75 = arith.constant 75 : index
    %243 = memref.load %arg2[%c75] : memref<81xf32, #tpu.memory_space<smem>>
    %244 = vector.broadcast %243 : f32 to vector<8x128xf32>
    %245 = arith.mulf %244, %242 : vector<8x128xf32>
    %246 = arith.addf %226, %245 : vector<8x128xf32>
    %c36 = arith.constant 36 : index
    %247 = memref.load %arg2[%c36] : memref<81xf32, #tpu.memory_space<smem>>
    %248 = vector.broadcast %247 : f32 to vector<8x128xf32>
    %249 = arith.mulf %248, %1 : vector<8x128xf32>
    %c37 = arith.constant 37 : index
    %250 = memref.load %arg2[%c37] : memref<81xf32, #tpu.memory_space<smem>>
    %251 = vector.broadcast %250 : f32 to vector<8x128xf32>
    %252 = arith.mulf %251, %3 : vector<8x128xf32>
    %253 = arith.addf %249, %252 : vector<8x128xf32>
    %c38 = arith.constant 38 : index
    %254 = memref.load %arg2[%c38] : memref<81xf32, #tpu.memory_space<smem>>
    %255 = vector.broadcast %254 : f32 to vector<8x128xf32>
    %256 = arith.mulf %255, %5 : vector<8x128xf32>
    %257 = arith.addf %253, %256 : vector<8x128xf32>
    %c60 = arith.constant 60 : index
    %258 = memref.load %arg2[%c60] : memref<81xf32, #tpu.memory_space<smem>>
    %259 = vector.broadcast %258 : f32 to vector<8x128xf32>
    %260 = arith.addf %257, %259 : vector<8x128xf32>
    %cst_24 = arith.constant 0.000000e+00 : f32
    %261 = vector.broadcast %cst_24 : f32 to vector<8x128xf32>
    %262 = arith.maximumf %260, %261 : vector<8x128xf32>
    %c76 = arith.constant 76 : index
    %263 = memref.load %arg2[%c76] : memref<81xf32, #tpu.memory_space<smem>>
    %264 = vector.broadcast %263 : f32 to vector<8x128xf32>
    %265 = arith.mulf %264, %262 : vector<8x128xf32>
    %266 = arith.addf %246, %265 : vector<8x128xf32>
    %c39 = arith.constant 39 : index
    %267 = memref.load %arg2[%c39] : memref<81xf32, #tpu.memory_space<smem>>
    %268 = vector.broadcast %267 : f32 to vector<8x128xf32>
    %269 = arith.mulf %268, %1 : vector<8x128xf32>
    %c40 = arith.constant 40 : index
    %270 = memref.load %arg2[%c40] : memref<81xf32, #tpu.memory_space<smem>>
    %271 = vector.broadcast %270 : f32 to vector<8x128xf32>
    %272 = arith.mulf %271, %3 : vector<8x128xf32>
    %273 = arith.addf %269, %272 : vector<8x128xf32>
    %c41 = arith.constant 41 : index
    %274 = memref.load %arg2[%c41] : memref<81xf32, #tpu.memory_space<smem>>
    %275 = vector.broadcast %274 : f32 to vector<8x128xf32>
    %276 = arith.mulf %275, %5 : vector<8x128xf32>
    %277 = arith.addf %273, %276 : vector<8x128xf32>
    %c61 = arith.constant 61 : index
    %278 = memref.load %arg2[%c61] : memref<81xf32, #tpu.memory_space<smem>>
    %279 = vector.broadcast %278 : f32 to vector<8x128xf32>
    %280 = arith.addf %277, %279 : vector<8x128xf32>
    %cst_25 = arith.constant 0.000000e+00 : f32
    %281 = vector.broadcast %cst_25 : f32 to vector<8x128xf32>
    %282 = arith.maximumf %280, %281 : vector<8x128xf32>
    %c77 = arith.constant 77 : index
    %283 = memref.load %arg2[%c77] : memref<81xf32, #tpu.memory_space<smem>>
    %284 = vector.broadcast %283 : f32 to vector<8x128xf32>
    %285 = arith.mulf %284, %282 : vector<8x128xf32>
    %286 = arith.addf %266, %285 : vector<8x128xf32>
    %c42 = arith.constant 42 : index
    %287 = memref.load %arg2[%c42] : memref<81xf32, #tpu.memory_space<smem>>
    %288 = vector.broadcast %287 : f32 to vector<8x128xf32>
    %289 = arith.mulf %288, %1 : vector<8x128xf32>
    %c43 = arith.constant 43 : index
    %290 = memref.load %arg2[%c43] : memref<81xf32, #tpu.memory_space<smem>>
    %291 = vector.broadcast %290 : f32 to vector<8x128xf32>
    %292 = arith.mulf %291, %3 : vector<8x128xf32>
    %293 = arith.addf %289, %292 : vector<8x128xf32>
    %c44 = arith.constant 44 : index
    %294 = memref.load %arg2[%c44] : memref<81xf32, #tpu.memory_space<smem>>
    %295 = vector.broadcast %294 : f32 to vector<8x128xf32>
    %296 = arith.mulf %295, %5 : vector<8x128xf32>
    %297 = arith.addf %293, %296 : vector<8x128xf32>
    %c62 = arith.constant 62 : index
    %298 = memref.load %arg2[%c62] : memref<81xf32, #tpu.memory_space<smem>>
    %299 = vector.broadcast %298 : f32 to vector<8x128xf32>
    %300 = arith.addf %297, %299 : vector<8x128xf32>
    %cst_26 = arith.constant 0.000000e+00 : f32
    %301 = vector.broadcast %cst_26 : f32 to vector<8x128xf32>
    %302 = arith.maximumf %300, %301 : vector<8x128xf32>
    %c78 = arith.constant 78 : index
    %303 = memref.load %arg2[%c78] : memref<81xf32, #tpu.memory_space<smem>>
    %304 = vector.broadcast %303 : f32 to vector<8x128xf32>
    %305 = arith.mulf %304, %302 : vector<8x128xf32>
    %306 = arith.addf %286, %305 : vector<8x128xf32>
    %c45 = arith.constant 45 : index
    %307 = memref.load %arg2[%c45] : memref<81xf32, #tpu.memory_space<smem>>
    %308 = vector.broadcast %307 : f32 to vector<8x128xf32>
    %309 = arith.mulf %308, %1 : vector<8x128xf32>
    %c46 = arith.constant 46 : index
    %310 = memref.load %arg2[%c46] : memref<81xf32, #tpu.memory_space<smem>>
    %311 = vector.broadcast %310 : f32 to vector<8x128xf32>
    %312 = arith.mulf %311, %3 : vector<8x128xf32>
    %313 = arith.addf %309, %312 : vector<8x128xf32>
    %c47 = arith.constant 47 : index
    %314 = memref.load %arg2[%c47] : memref<81xf32, #tpu.memory_space<smem>>
    %315 = vector.broadcast %314 : f32 to vector<8x128xf32>
    %316 = arith.mulf %315, %5 : vector<8x128xf32>
    %317 = arith.addf %313, %316 : vector<8x128xf32>
    %c63 = arith.constant 63 : index
    %318 = memref.load %arg2[%c63] : memref<81xf32, #tpu.memory_space<smem>>
    %319 = vector.broadcast %318 : f32 to vector<8x128xf32>
    %320 = arith.addf %317, %319 : vector<8x128xf32>
    %cst_27 = arith.constant 0.000000e+00 : f32
    %321 = vector.broadcast %cst_27 : f32 to vector<8x128xf32>
    %322 = arith.maximumf %320, %321 : vector<8x128xf32>
    %c79 = arith.constant 79 : index
    %323 = memref.load %arg2[%c79] : memref<81xf32, #tpu.memory_space<smem>>
    %324 = vector.broadcast %323 : f32 to vector<8x128xf32>
    %325 = arith.mulf %324, %322 : vector<8x128xf32>
    %326 = arith.addf %306, %325 : vector<8x128xf32>
    %c80 = arith.constant 80 : index
    %327 = memref.load %arg2[%c80] : memref<81xf32, #tpu.memory_space<smem>>
    %328 = vector.broadcast %327 : f32 to vector<8x128xf32>
    %329 = arith.addf %326, %328 : vector<8x128xf32>
    %cst_28 = arith.constant 0.000000e+00 : f32
    %330 = vector.broadcast %cst_28 : f32 to vector<8x128xf32>
    %331 = arith.subf %330, %329 : vector<8x128xf32>
    %332 = math.exp %331 : vector<8x128xf32>
    %cst_29 = arith.constant 1.000000e+00 : f32
    %333 = vector.broadcast %cst_29 : f32 to vector<8x128xf32>
    %334 = arith.addf %333, %332 : vector<8x128xf32>
    %335 = tpu.reciprocal %334 {approx = true} : vector<8x128xf32> -> vector<8x128xf32>
    %c0_30 = arith.constant 0 : index
    %c0_31 = arith.constant 0 : index
    %c0_32 = arith.constant 0 : index
    %336 = vector.load %arg4[%c0_30, %c0_31, %c0_32] : memref<1x8x128xf32, #tpu.memory_space<vmem>>, vector<1x8x128xf32>
    %337 = vector.shape_cast %336 : vector<1x8x128xf32> to vector<8x128xf32>
    %338 = vector.shape_cast %335 : vector<8x128xf32> to vector<1x8x128xf32>
    tpu.vector_store %arg4[%c0_30, %c0_31, %c0_32], %338 {strides = array<i32>} : memref<1x8x128xf32, #tpu.memory_space<vmem>>, vector<1x8x128xf32>,
    return
  }
  func.func @transform_0(%arg0: i32, %arg1: i32, %arg2: memref<81xf32, #tpu.memory_space<smem>>) -> (i32, i32, i32, i32) {
    %c0_i32 = arith.constant 0 : i32
    %c0_i32_0 = arith.constant 0 : i32
    %c0_i32_1 = arith.constant 0 : i32
    return %arg0, %c0_i32, %arg1, %c0_i32_0 : i32, i32, i32, i32
  }
  func.func @transform_1(%arg0: i32, %arg1: i32, %arg2: memref<81xf32, #tpu.memory_space<smem>>) -> (i32, i32, i32) {
    %c0_i32 = arith.constant 0 : i32
    %c0_i32_0 = arith.constant 0 : i32
    return %arg0, %arg1, %c0_i32 : i32, i32, i32
  }
}

</mosaic_0001>

<bundles_post_ra>
// kernel: tpu_custom_call.1
= control target key start
LH: loop header
LB: loop body
LE: loop exit
PB: predicated region body
PF: predicated region fallthrough
CT: control target
= control target key end

     0   :  { %s1341_s0 = inlined_call_operand.hbm [shape: f32[81], index: 0, kind: input, shape index: {}]   ;;  %s1342_s1 = inlined_call_operand.hbm [shape: f32[2,3,8,128], index: 1, kind: input, shape index: {}]   ;;  %s1343_s2 = inlined_call_operand.hbm [shape: f32[2,8,128], index: 2, kind: output, shape index: {}]  }
   0x1   :  { %s736_s11 = scalar_lea.hbm %s1341_s0, 16 }
   0x2   :  { %p737_p0 = scmp.ne.s32.totalorder %s1341_s0, %s736_s11  ;;  %p740_p1 = scmp.lt.u32.totalorder %s736_s11, %s1341_s0 }
   0x4   :  { %p742_p2 = pnand %p740_p1, %p737_p0 }
   0x6   :  { %745 = shalt.err (!%p742_p2)  }
   0x7   :  { %s862_s16 = smov [#allocation3]  }
   0x8   :  { %8 = dma.hbm_to_smem %s1341_s0, 16, %s862_s16, [#allocation2] }
   0x9   :  { %828 = dma.done.wait [#allocation2], 16 }
   0xa   :  { %829 = vsyncadd [#allocation2], 4294967280 }
   0xb   :  { %10 = sfence }
   0xc   :  { %11 = vsyncpa [#allocation5], 0 }
   0xd   :  { %13 = vsyncpa [#allocation5 + $0x1], 0 }
   0xe   :  { %14 = vsyncpa [#allocation6], 0 }
   0xf   :  { %16 = vsyncpa [#allocation6 + $0x1], 0  ;;  %s894_s19 = smov 0   ;;  %s896_s20 = smov 0  }
  0x10   :  { %s898_s21 = smov 0   ;;  %s900_s22 = smov 0  }
  0x11   :  { %s902_s23 = smov 0   ;;  %s904_s24 = smov 0  }
  0x12 LB: > { %s571_s0 = sadd.s32 4294967295, %s860_s24   ;;  %s572_s25 = sadd.s32 4294967294, %s860_s24   ;;  %s860_s24 = sphi %s904_s24, %s22_s24   ;;  %s856_s23 = sphi %s902_s23, %s1358_s23   ;;  %s852_s22 = sphi %s900_s22, %s1357_s22   ;;  %s848_s21 = sphi %s898_s21, %s1356_s21   ;;  %s844_s20 = sphi %s896_s20, %s1355_s20   ;;  %s840_s19 = sphi %s894_s19, %s1354_s19  }
  0x13   : > { %s34_s26 = sadd.s32 1, %s856_s23  ;;  %s43_s27 = sadd.s32 1, %s848_s21 }
  0x14   : > { %p36_p3 = scmp.ge.s32.totalorder %s34_s26, 2  ;;  %p50_p4 = scmp.ne.s32.totalorder %s848_s21, %s844_s20 }
  0x15   : > { %p51_p5 = scmp.eq.s32.totalorder %s860_s24, 0  ;;  %p56_p6 = scmp.ne.s32.totalorder %s844_s20, %s840_s19 }
  0x16   : > { %s1360_s26 = smov (%p36_p3, %s34_s26), 0  ;;  %p57_p8 = scmp.eq.s32.totalorder %s571_s0, 0 }
  0x17   : > { %p935_p7 = por %p51_p5, %p50_p4  ;;  %s38_s29 = ssub.s32 %s856_s23, %s1360_s26 }
  0x18   : > { %p82_p9 = scmp.eq.s32.totalorder %s571_s0, 1  ;;  %p41_p10 = scmp.eq.s32.totalorder %s38_s29, 0 }
  0x19   : > { %p941_p11 = por %p57_p8, %p56_p6  ;;  %p88_p13 = scmp.eq.s32.totalorder %s572_s25, 1 }
  0x1a   : > { %p945_p12 = por %p82_p9, %p50_p4  ;;  %p679_p2 = scmp.lt.s32.totalorder %s860_s24, 2 }
  0x1b   : > { %s950_s4 = scalar_select %p41_p10, %s848_s21, %s43_s27  }
  0x1c   : > { %s1347_s3 = scalar_select %p945_p12, 1, 0 }
  0x1d   : > { %p952_p0 = por %p88_p13, %p56_p6  ;;  %s108_s6 = sand.u32 1, %s848_s21  }
  0x1e   : > { %s664_s7 = smul.u32 24, %s108_s6  ;;  %p962_p3 = pnand %p679_p2, %p935_p7 }
  0x1f   : > { %s1348_s5 = scalar_select %p952_p0, 1, 0 }
  0x20   : > { %s665_s8 = smul.u32 384, %s856_s23  ;;  %s112_s13 = scalar_lea.vmem [#allocation4], %s664_s7 }
  0x21   : > { %s120_s14 = sshll.u32 %s112_s13, 4  ;;  %s974_s15 = scalar_lea.sflag [#allocation5], %s108_s6  ;;  %s971_s14 = int_to_ptr.vmem [resolvable:$true] %s120_s14 }
  0x22   : > { %s969_s12 = scalar_lea.hbm %s1342_s1, %s665_s8  ;;  %p748_p6 = pneg %p962_p3 }
  0x23   : > { %s746_s16 = scalar_lea.hbm %s969_s12, 384  ;;  %s751_s0 = scalar_lea.hbm %s1342_s1, 768 }
  0x24   : > { %p747_p5 = scmp.ne.s32.totalorder %s969_s12, %s746_s16  ;;  %p752_p9 = scmp.lt.u32.totalorder %s969_s12, %s1342_s1 }
  0x25   : > { %p753_p10 = scmp.lt.u32.totalorder %s751_s0, %s746_s16  ;;  %p755_p2 = scmp.lt.u32.totalorder %s746_s16, %s969_s12 }
  0x26   : > { %p749_p7 = pnand %p748_p6, %p747_p5 }
  0x27   : > { %p754_p13 = por %p753_p10, %p752_p9 }
  0x28   : > { %p750_p8 = pneg %p749_p7 }
  0x29   : > { %p756_p1 = por %p755_p2, %p754_p13 }
  0x2b   : > { %p757_p4 = pnand %p756_p1, %p750_p8 }
  0x2d   : > { %760 = shalt.err (!%p757_p4)
}
  0x2e   : > { %s761_s28 = scalar_lea.vmem %s971_s14, 384  ;;  %s863_s29 = smov [#allocation4]  }
  0x2f   : > { %p762_p5 = scmp.ne.s32.totalorder %s971_s14, %s761_s28  ;;  %s766_s6 = sshll.u32 %s863_s29, 4  ;;  %s767_s6 = int_to_ptr.vmem [resolvable:$false] %s766_s6 }
  0x30   : > { %s768_s7 = scalar_lea.vmem %s767_s6, 768  ;;  %p769_p12 = scmp.lt.s32.totalorder %s971_s14, %s767_s6 }
  0x31   : > { %p764_p7 = pnand %p762_p5, %p748_p6  ;;  %p770_p9 = scmp.lt.s32.totalorder %s768_s7, %s761_s28 }
  0x33   : > { %p765_p0 = pneg %p764_p7  ;;  %p771_p10 = por %p770_p9, %p769_p12 }
  0x35   : > { %p772_p13 = pnand %p771_p10, %p765_p0 }
  0x37   : > { %775 = shalt.err (!%p772_p13)
}
  0x38   : > { %s864_s8 = smov 128   ;;  %s865_s10 = smov 8  }
  0x39   : > { %674 = dma.hbm_to_vmem [thread:$0]  (!%p962_p3), %s969_s12, 384, %s971_s14, %s974_s15, %s864_s8, %s864_s8, %s865_s10  }
  0x3a   : > { %p128_p1 = scmp.lt.s32.totalorder %s860_s24, 3  ;;  %p1350_p4 = scmp.ge.s32.totalorder %s860_s24, 1 }
  0x3c   : > { %p129_p6 = pnand %p1350_p4, %p128_p1 }
  0x3d   : > { %s1006_s11 = sand.u32 (!%p129_p6), 1, %s844_s20  }
  0x3e   : > { %132 = sbr.rel (%p129_p6) target bundleno = 185 (0xb9), region = 24  ;;  %s135_s16 = scalar_lea.sflag (!%p129_p6), [#allocation5], %s1006_s11 }
  0x3f   : > { %s666_s13 = smul.u32 (!%p129_p6), 24, %s1006_s11 }
  0x41   : > { %s138_s17 = scalar_lea.vmem (!%p129_p6), [#allocation4], %s666_s13 }
  0x45   : > { %831 = dma.done.wait (%p941_p11), %s135_s16, 384  }
  0x46   : > { %833 = vsyncadd (%p941_p11), %s135_s16, 4294966912  ;;  %s162_s9 = sld [smem:[#allocation3]]  ;;  %s580_s12 = sld [smem:[#allocation3 + $0x1]]  ;;  %v1024_v0 = vld [vmem:[%s138_s17] sm:$0xff]  ;;  %v1026_v1 = vld [vmem:[%s138_s17 + $0x8] sm:$0xff] }
  0x47   : > { %s581_s14 = sld [smem:[#allocation3 + $0x2]]  ;;  %s1014_s15 = sld [smem:[#allocation3 + $0x30]]  ;;  %v1028_v2 = vld [vmem:[%s138_s17 + $0x10] sm:$0xff] }
  0x48   : > { %s1016_s18 = sld [smem:[#allocation3 + $0x40]]  ;;  %s584_s0 = sld [smem:[#allocation3 + $0x3]] }
  0x49   : > { %s585_s25 = sld [smem:[#allocation3 + $0x4]]  ;;  %s586_s27 = sld [smem:[#allocation3 + $0x5]] }
  0x4a   : > { %s1018_s28 = sld [smem:[#allocation3 + $0x31]]  ;;  %s1022_s6 = sld [smem:[#allocation3 + $0x6]] }
  0x4b   : > { %s1020_s29 = sld [smem:[#allocation3 + $0x41]]  ;;  %s1030_s30 = sld [smem:[#allocation3 + $0x7]] }
  0x4c   : > { %v163_v3 = vstv %s162_s9  ;;  %v166_v5 = vstv %s580_s12  ;;  %s1033_s7 = sld [smem:[#allocation3 + $0x8]]  ;;  %s1035_s8 = sld [smem:[#allocation3 + $0x32]] }
  0x4d   : > { %v164_v4 = vmul.f32 %v163_v3, %v1024_v0  ;;  %v170_v6 = vstv %s581_s14  ;;  %v167_v7 = vmul.f32 %v1026_v1, %v166_v5  ;;  %s1039_s10 = sld [smem:[#allocation3 + $0x42]]  ;;  %s1041_s13 = sld [smem:[#allocation3 + $0x9]]  ;;  %v174_v15 = vstv %s1014_s15 }
  0x4e   : > { %v171_v8 = vmul.f32 %v1028_v2, %v170_v6  ;;  %v182_v9 = vstv %s584_s0  ;;  %s1043_s16 = sld [smem:[#allocation3 + $0xa]]  ;;  %s1045_s17 = sld [smem:[#allocation3 + $0xb]]  ;;  %v178_v16 = vstv %s1016_s18 }
  0x4f   : > { %v185_v10 = vstv %s585_s25  ;;  %v168_v11 = vadd.f32 %v167_v7, %v164_v4  ;;  %v183_v12 = vmul.f32 %v182_v9, %v1024_v0  ;;  %v189_v14 = vstv %s586_s27  ;;  %s1049_s9 = sld [smem:[#allocation3 + $0x33]]  ;;  %s1055_s12 = sld [smem:[#allocation3 + $0xc]] }
  0x50   : > { %v186_v13 = vmul.f32 %v1026_v1, %v185_v10  ;;  %v190_v17 = vmul.f32 %v1028_v2, %v189_v14  ;;  %v201_v18 = vstv %s1022_s6  ;;  %s1057_s14 = sld [smem:[#allocation3 + $0xd]]  ;;  %s1061_s0 = sld [smem:[#allocation3 + $0x43]]  ;;  %v193_v23 = vstv %s1018_s28 }
  0x51   : > { %v172_v19 = vadd.f32 %v171_v8, %v168_v11  ;;  %v202_v21 = vmul.f32 %v201_v18, %v1024_v0  ;;  %v204_v22 = vstv %s1030_s30  ;;  %s1063_s15 = sld [smem:[#allocation3 + $0xe]]  ;;  %v197_v24 = vstv %s1020_s29  ;;  %s1069_s18 = sld [smem:[#allocation3 + $0x34]] }
  0x52   : > { %v187_v20 = vadd.f32 %v186_v13, %v183_v12  ;;  %v205_v25 = vmul.f32 %v1026_v1, %v204_v22  ;;  %v208_v26 = vstv %s1033_s7  ;;  %s1071_s25 = sld [smem:[#allocation3 + $0xf]]  ;;  %v212_v30 = vstv %s1035_s8  ;;  %s1075_s27 = sld [smem:[#allocation3 + $0x44]] }
  0x53   : > { %v175_v27 = vadd.f32 %v174_v15, %v172_v19  ;;  %v209_v29 = vmul.f32 %v1028_v2, %v208_v26  ;;  %v220_v32 = vstv %s1041_s13  ;;  %s1080_s28 = sld [smem:[#allocation3 + $0x10]]  ;;  %s1082_s29 = sld [smem:[#allocation3 + $0x11]]  ;;  %v216_v40 = vstv %s1039_s10 }
  0x54   : > { %v191_v28 = vadd.f32 %v190_v17, %v187_v20  ;;  %v206_v31 = vadd.f32 %v205_v25, %v202_v21  ;;  %v223_v33 = vstv %s1043_s16  ;;  %v227_v34 = vstv %s1045_s17  ;;  %s1086_s6 = sld [smem:[#allocation3 + $0x35]]  ;;  %s1091_s30 = sld [smem:[#allocation3 + $0x12]] }
  0x55   : > { %v176_v35 = vmax.f32 %v175_v27, 0.0  ;;  %v221_v37 = vmul.f32 %v220_v32, %v1024_v0  ;;  %v224_v38 = vmul.f32 %v1026_v1, %v223_v33  ;;  %v228_v41 = vmul.f32 %v1028_v2, %v227_v34  ;;  %s1093_s7 = sld [smem:[#allocation3 + $0x13]]  ;;  %s1096_s8 = sld [smem:[#allocation3 + $0x45]] }
  0x56   : > { %v194_v36 = vadd.f32 %v193_v23, %v191_v28  ;;  %v210_v39 = vadd.f32 %v209_v29, %v206_v31  ;;  %v231_v42 = vstv %s1049_s9  ;;  %v239_v46 = vstv %s1055_s12  ;;  %s1101_s10 = sld [smem:[#allocation3 + $0x14]]  ;;  %s1103_s13 = sld [smem:[#allocation3 + $0x36]] }
  0x57   : > { %v179_v43 = vmul.f32 %v178_v16, %v176_v35  ;;  %v225_v45 = vadd.f32 %v224_v38, %v221_v37  ;;  %v240_v48 = vmul.f32 %v239_v46, %v1024_v0  ;;  %v242_v49 = vstv %s1057_s14  ;;  %s1107_s16 = sld [smem:[#allocation3 + $0x15]]  ;;  %s1112_s17 = sld [smem:[#allocation3 + $0x16]] }
  0x58   : > { %v195_v44 = vmax.f32 %v194_v36, 0.0  ;;  %v213_v47 = vadd.f32 %v212_v30, %v210_v39  ;;  %v246_v50 = vstv %s1063_s15  ;;  %v243_v53 = vmul.f32 %v1026_v1, %v242_v49  ;;  %s1114_s9 = sld [smem:[#allocation3 + $0x17]]  ;;  %s1120_s12 = sld [smem:[#allocation3 + $0x46]] }
  0x59   : > { %v229_v52 = vadd.f32 %v228_v41, %v225_v45  ;;  %v247_v54 = vmul.f32 %v1028_v2, %v246_v50  ;;  %v235_v56 = vstv %s1061_s0  ;;  %v250_v57 = vstv %s1069_s18  ;;  %s1122_s14 = sld [smem:[#allocation3 + $0x37]]  ;;  %s1126_s0 = sld [smem:[#allocation3 + $0x18]] }
  0x5a   : > { %v198_v51 = vmul.f32 %v197_v24, %v195_v44  ;;  %v214_v55 = vmax.f32 %v213_v47, 0.0  ;;  %v258_v58 = vstv %s1071_s25  ;;  %v244_v61 = vadd.f32 %v243_v53, %v240_v48  ;;  %s1131_s15 = sld [smem:[#allocation3 + $0x19]]  ;;  %s1133_s18 = sld [smem:[#allocation3 + $0x1a]] }
  0x5b   : > { %v232_v60 = vadd.f32 %v231_v42, %v229_v52  ;;  %v259_v62 = vmul.f32 %v258_v58, %v1024_v0  ;;  %v254_v3 = vstv %s1075_s27  ;;  %v261_v4 = vstv %s1080_s28  ;;  %s1136_s25 = sld [smem:[#allocation3 + $0x47]]  ;;  %s1142_s27 = sld [smem:[#allocation3 + $0x38]] }
  0x5c   : > { %v199_v59 = vadd.f32 %v198_v51, %v179_v43  ;;  %v217_v63 = vmul.f32 %v216_v40, %v214_v55  ;;  %v265_v5 = vstv %s1082_s29  ;;  %v248_v7 = vadd.f32 %v247_v54, %v244_v61  ;;  %s1144_s28 = sld [smem:[#allocation3 + $0x1b]]  ;;  %s1147_s29 = sld [smem:[#allocation3 + $0x48]] }
  0x5d   : > { %v233_v6 = vmax.f32 %v232_v60, 0.0  ;;  %v262_v8 = vmul.f32 %v1026_v1, %v261_v4  ;;  %v266_v9 = vmul.f32 %v1028_v2, %v265_v5  ;;  %v269_v11 = vstv %s1086_s6  ;;  %s1152_s6 = sld [smem:[#allocation3 + $0x1c]]  ;;  %p1351_p12 = scmp.ne.s32.totalorder %s1347_s3, 0 }
  0x5e   : > { %v218_v10 = vadd.f32 %v217_v63, %v199_v59  ;;  %v277_v12 = vstv %s1091_s30  ;;  %v280_v13 = vstv %s1093_s7  ;;  %v251_v15 = vadd.f32 %v250_v57, %v248_v7  ;;  %s1154_s30 = sld [smem:[#allocation3 + $0x1d]]  ;;  %s1158_s7 = sld [smem:[#allocation3 + $0x39]] }
  0x5f   : > { %v236_v14 = vmul.f32 %v235_v56, %v233_v6  ;;  %v263_v16 = vadd.f32 %v262_v8, %v259_v62  ;;  %v278_v17 = vmul.f32 %v277_v12, %v1024_v0  ;;  %v273_v18 = vstv %s1096_s8  ;;  %s1163_s8 = sld [smem:[#allocation3 + $0x1e]] }
  0x60   : > { %v281_v19 = vmul.f32 %v1026_v1, %v280_v13  ;;  %v284_v20 = vstv %s1101_s10  ;;  %v288_v21 = vstv %s1103_s13  ;;  %v252_v23 = vmax.f32 %v251_v15, 0.0  ;;  %s1165_s10 = sld [smem:[#allocation3 + $0x1f]]  ;;  %s1168_s13 = sld [smem:[#allocation3 + $0x49]] }
  0x61   : > { %v237_v22 = vadd.f32 %v236_v14, %v218_v10  ;;  %v267_v24 = vadd.f32 %v266_v9, %v263_v16  ;;  %v285_v25 = vmul.f32 %v1028_v2, %v284_v20  ;;  %v296_v27 = vstv %s1107_s16  ;;  %s1173_s16 = sld [smem:[#allocation3 + $0x20]] }
  0x62   : > { %v282_v26 = vadd.f32 %v281_v19, %v278_v17  ;;  %v299_v28 = vstv %s1112_s17  ;;  %v303_v29 = vstv %s1114_s9  ;;  %v255_v30 = vmul.f32 %v254_v3, %v252_v23  ;;  %s1175_s17 = sld [smem:[#allocation3 + $0x3a]]  ;;  %s1179_s9 = sld [smem:[#allocation3 + $0x21]] }
  0x63   : > { %v270_v31 = vadd.f32 %v269_v11, %v267_v24  ;;  %v297_v32 = vmul.f32 %v296_v27, %v1024_v0  ;;  %v300_v33 = vmul.f32 %v1026_v1, %v299_v28  ;;  %v292_v35 = vstv %s1120_s12  ;;  %s1184_s12 = sld [smem:[#allocation3 + $0x22]] }
  0x64   : > { %v286_v34 = vadd.f32 %v285_v25, %v282_v26  ;;  %v304_v36 = vmul.f32 %v1028_v2, %v303_v29  ;;  %v307_v37 = vstv %s1122_s14  ;;  %v256_v38 = vadd.f32 %v255_v30, %v237_v22  ;;  %s1186_s14 = sld [smem:[#allocation3 + $0x23]] }
  0x65   : > { %v271_v39 = vmax.f32 %v270_v31, 0.0  ;;  %v301_v40 = vadd.f32 %v300_v33, %v297_v32  ;;  %v315_v41 = vstv %s1126_s0  ;;  %v318_v44 = vstv %s1131_s15  ;;  %s1192_s0 = sld [smem:[#allocation3 + $0x4a]]  ;;  %s1194_s15 = sld [smem:[#allocation3 + $0x3b]] }
  0x66   : > { %v289_v42 = vadd.f32 %v288_v21, %v286_v34  ;;  %v316_v43 = vmul.f32 %v315_v41, %v1024_v0  ;;  %v322_v45 = vstv %s1133_s18  ;;  %v319_v48 = vmul.f32 %v1026_v1, %v318_v44  ;;  %s1198_s18 = sld [smem:[#allocation3 + $0x24]] }
  0x67   : > { %v274_v46 = vmul.f32 %v273_v18, %v271_v39  ;;  %v305_v47 = vadd.f32 %v304_v36, %v301_v40  ;;  %v323_v49 = vmul.f32 %v1028_v2, %v322_v45  ;;  %v311_v51 = vstv %s1136_s25  ;;  %s1203_s25 = sld [smem:[#allocation3 + $0x25]] }
  0x68   : > { %v290_v50 = vmax.f32 %v289_v42, 0.0  ;;  %v326_v52 = vstv %s1142_s27  ;;  %v334_v53 = vstv %s1144_s28  ;;  %v320_v56 = vadd.f32 %v319_v48, %v316_v43  ;;  %s1205_s27 = sld [smem:[#allocation3 + $0x26]]  ;;  %s1212_s28 = sld [smem:[#allocation3 + $0x4b]] }
  0x69   : > { %v275_v54 = vadd.f32 %v274_v46, %v256_v38  ;;  %v308_v55 = vadd.f32 %v307_v37, %v305_v47  ;;  %v335_v57 = vmul.f32 %v334_v53, %v1024_v0  ;;  %v330_v59 = vstv %s1147_s29  ;;  %s1214_s29 = sld [smem:[#allocation3 + $0x27]] }
  0x6a   : > { %v293_v58 = vmul.f32 %v292_v35, %v290_v50  ;;  %v337_v60 = vstv %s1152_s6  ;;  %v341_v61 = vstv %s1154_s30  ;;  %v324_v63 = vadd.f32 %v323_v49, %v320_v56  ;;  %s1217_s6 = sld [smem:[#allocation3 + $0x3c]]  ;;  %s1222_s30 = sld [smem:[#allocation3 + $0x28]] }
  0x6b   : > { %v309_v62 = vmax.f32 %v308_v55, 0.0  ;;  %v338_v3 = vmul.f32 %v1026_v1, %v337_v60  ;;  %v342_v4 = vmul.f32 %v1028_v2, %v341_v61  ;;  %v345_v6 = vstv %s1158_s7  ;;  %s1224_s7 = sld [smem:[#allocation3 + $0x29]] }
  0x6c   : > { %v294_v5 = vadd.f32 %v293_v58, %v275_v54  ;;  %v353_v7 = vstv %s1163_s8  ;;  %v356_v8 = vstv %s1165_s10  ;;  %v327_v10 = vadd.f32 %v326_v52, %v324_v63  ;;  %s1228_s8 = sld [smem:[#allocation3 + $0x4c]]  ;;  %s1233_s10 = sld [smem:[#allocation3 + $0x2a]] }
  0x6d   : > { %v312_v9 = vmul.f32 %v311_v51, %v309_v62  ;;  %v339_v11 = vadd.f32 %v338_v3, %v335_v57  ;;  %v354_v12 = vmul.f32 %v353_v7, %v1024_v0  ;;  %v349_v13 = vstv %s1168_s13  ;;  %s1235_s13 = sld [smem:[#allocation3 + $0x2b]] }
  0x6e   : > { %v357_v14 = vmul.f32 %v1026_v1, %v356_v8  ;;  %v360_v15 = vstv %s1173_s16  ;;  %v364_v16 = vstv %s1175_s17  ;;  %v328_v18 = vmax.f32 %v327_v10, 0.0  ;;  %s1238_s16 = sld [smem:[#allocation3 + $0x3d]]  ;;  %s1243_s17 = sld [smem:[#allocation3 + $0x2c]] }
  0x6f   : > { %v313_v17 = vadd.f32 %v312_v9, %v294_v5  ;;  %v343_v19 = vadd.f32 %v342_v4, %v339_v11  ;;  %v361_v20 = vmul.f32 %v1028_v2, %v360_v15  ;;  %v372_v22 = vstv %s1179_s9  ;;  %s1245_s9 = sld [smem:[#allocation3 + $0x3e]] }
  0x70   : > { %v358_v21 = vadd.f32 %v357_v14, %v354_v12  ;;  %v375_v23 = vstv %s1184_s12  ;;  %v379_v24 = vstv %s1186_s14  ;;  %v331_v25 = vmul.f32 %v330_v59, %v328_v18  ;;  %s1249_s12 = sld [smem:[#allocation3 + $0x2d]]  ;;  %s1253_s14 = sld [smem:[#allocation3 + $0x2e]] }
  0x71   : > { %v346_v26 = vadd.f32 %v345_v6, %v343_v19  ;;  %v373_v27 = vmul.f32 %v372_v22, %v1024_v0  ;;  %v376_v28 = vmul.f32 %v1026_v1, %v375_v23  ;;  %v368_v30 = vstv %s1192_s0  ;;  %s1255_s0 = sld [smem:[#allocation3 + $0x2f]] }
  0x72   : > { %v362_v29 = vadd.f32 %v361_v20, %v358_v21  ;;  %v380_v31 = vmul.f32 %v1028_v2, %v379_v24  ;;  %v383_v32 = vstv %s1194_s15  ;;  %v332_v33 = vadd.f32 %v331_v25, %v313_v17  ;;  %s1261_s15 = sld [smem:[#allocation3 + $0x4d]] }
  0x73   : > { %v347_v34 = vmax.f32 %v346_v26, 0.0  ;;  %v377_v35 = vadd.f32 %v376_v28, %v373_v27  ;;  %v391_v36 = vstv %s1198_s18  ;;  %v394_v39 = vstv %s1203_s25  ;;  %s1268_s18 = sld [smem:[#allocation3 + $0x3f]]  ;;  %s1271_s25 = sld [smem:[#allocation3 + $0x4e]] }
  0x74   : > { %v365_v37 = vadd.f32 %v364_v16, %v362_v29  ;;  %v392_v38 = vmul.f32 %v391_v36, %v1024_v0  ;;  %v398_v40 = vstv %s1205_s27  ;;  %v395_v43 = vmul.f32 %v1026_v1, %v394_v39  ;;  %s658_s27 = sld [smem:[#allocation3 + $0x4f]] }
  0x75   : > { %v350_v41 = vmul.f32 %v349_v13, %v347_v34  ;;  %v381_v42 = vadd.f32 %v380_v31, %v377_v35  ;;  %v399_v44 = vmul.f32 %v1028_v2, %v398_v40  ;;  %v387_v46 = vstv %s1212_s28  ;;  %s659_s28 = sld [smem:[#allocation3 + $0x50]] }
  0x76   : > { %v366_v45 = vmax.f32 %v365_v37, 0.0  ;;  %v410_v47 = vstv %s1214_s29  ;;  %v396_v50 = vadd.f32 %v395_v43, %v392_v38  ;;  %v402_v53 = vstv %s1217_s6  ;;  %s577_s29 = sshll.u32 %s1006_s11, 3  ;;  %s661_s6 = sshll.u32 %s852_s22, 7 }
  0x77   : > { %v351_v48 = vadd.f32 %v350_v41, %v332_v33  ;;  %v384_v49 = vadd.f32 %v383_v32, %v381_v42  ;;  %v411_v51 = vmul.f32 %v410_v47, %v1024_v0  ;;  %v413_v54 = vstv %s1222_s30  ;;  %s156_s30 = scalar_lea.vmem [#allocation7], %s577_s29  ;;  %s866_s22 = smov [#allocation7]  }
  0x78   : > { %v369_v52 = vmul.f32 %v368_v30, %v366_v45  ;;  %v417_v55 = vstv %s1224_s7  ;;  %v400_v57 = vadd.f32 %v399_v44, %v396_v50  ;;  %v414_v58 = vmul.f32 %v1026_v1, %v413_v54  ;;  %s490_s7 = sshll.u32 %s156_s30, 4  ;;  %s1294_s7 = int_to_ptr.vmem [resolvable:$true] %s490_s7 }
  0x79   : > { %v385_v56 = vmax.f32 %v384_v49, 0.0  ;;  %v418_v59 = vmul.f32 %v1028_v2, %v417_v55  ;;  %v406_v61 = vstv %s1228_s8  ;;  %v429_v62 = vstv %s1233_s10 }
  0x7a   : > { %v370_v60 = vadd.f32 %v369_v52, %v351_v48  ;;  %v432_v63 = vstv %s1235_s13  ;;  %v403_v4 = vadd.f32 %v402_v53, %v400_v57  ;;  %v415_v5 = vadd.f32 %v414_v58, %v411_v51  ;;  %s1292_s13 = scalar_lea.hbm %s1343_s2, %s661_s6 }
  0x7b   : > { %v388_v3 = vmul.f32 %v387_v46, %v385_v56  ;;  %v430_v6 = vmul.f32 %v429_v62, %v1024_v0  ;;  %v421_v7 = vstv %s1238_s16  ;;  %v433_v8 = vmul.f32 %v1026_v1, %v432_v63  ;;  %s476_s16 = scalar_lea.sflag [#allocation6], %s1006_s11 }
  0x7c   : > { %v436_v9 = vstv %s1243_s17  ;;  %v440_v10 = vstv %s1245_s9  ;;  %v404_v12 = vmax.f32 %v403_v4, 0.0  ;;  %v419_v13 = vadd.f32 %v418_v59, %v415_v5  ;;  %s776_s17 = scalar_lea.vmem %s1294_s7, 128  ;;  %s780_s9 = sshll.u32 %s866_s22, 4  ;;  %s781_s9 = int_to_ptr.vmem [resolvable:$false] %s780_s9 }
  0x7d   : > { %v389_v11 = vadd.f32 %v388_v3, %v370_v60  ;;  %v437_v14 = vmul.f32 %v1028_v2, %v436_v9  ;;  %v434_v15 = vadd.f32 %v433_v8, %v430_v6  ;;  %v448_v16 = vstv %s1249_s12  ;;  %p777_p11 = scmp.ne.s32.totalorder %s1294_s7, %s776_s17  ;;  %s782_s12 = scalar_lea.vmem %s781_s9, 256 }
  0x7e   : > { %v451_v17 = vstv %s1253_s14  ;;  %v455_v18 = vstv %s1255_s0  ;;  %v407_v19 = vmul.f32 %v406_v61, %v404_v12  ;;  %v422_v20 = vadd.f32 %v421_v7, %v419_v13  ;;  %p783_p8 = scmp.lt.s32.totalorder %s1294_s7, %s781_s9  ;;  %p784_p2 = scmp.lt.s32.totalorder %s782_s12, %s776_s17 }
  0x7f   : > { %v449_v21 = vmul.f32 %v448_v16, %v1024_v0  ;;  %v452_v22 = vmul.f32 %v1026_v1, %v451_v17  ;;  %v425_v23 = vstv %s1261_s15  ;;  %v438_v24 = vadd.f32 %v437_v14, %v434_v15  ;;  %p778_p0 = pnand %p777_p11, %p1351_p12 }
  0x80   : > { %v456_v25 = vmul.f32 %v1028_v2, %v455_v18  ;;  %v408_v26 = vadd.f32 %v407_v19, %v389_v11  ;;  %v423_v27 = vmax.f32 %v422_v20, 0.0  ;;  %v459_v30 = vstv %s1268_s18  ;;  %p785_p5 = por %p784_p2, %p783_p8 }
  0x81   : > { %v453_v28 = vadd.f32 %v452_v22, %v449_v21  ;;  %v441_v29 = vadd.f32 %v440_v10, %v438_v24  ;;  %v444_v32 = vstv %s1271_s25  ;;  %v463_v1 = vstv %s658_s27  ;;  %p779_p3 = pneg %p778_p0 }
  0x82   : > { %v426_v31 = vmul.f32 %v425_v23, %v423_v27  ;;  %v467_v2 = vstv %s659_s28 }
  0x83   : > { %v457_v33 = vadd.f32 %v456_v25, %v453_v28  ;;  %v442_v34 = vmax.f32 %v441_v29, 0.0  ;;  %p786_p7 = pnand %p785_p5, %p779_p3 }
  0x84   : > { %v427_v35 = vadd.f32 %v426_v31, %v408_v26 }
  0x85   : > { %v460_v36 = vadd.f32 %v459_v30, %v457_v33  ;;  %v445_v0 = vmul.f32 %v444_v32, %v442_v34 }
  0x87   : > { %v461_v37 = vmax.f32 %v460_v36, 0.0  ;;  %v446_v38 = vadd.f32 %v445_v0, %v427_v35 }
  0x89   : > { %v464_v39 = vmul.f32 %v463_v1, %v461_v37 }
  0x8b   : > { %v465_v40 = vadd.f32 %v464_v39, %v446_v38 }
  0x8d   : > { %v468_v41 = vadd.f32 %v467_v2, %v465_v40 }
  0x8f   : > { %v469_v42 = vsub.f32 0.0, %v468_v41 }
  0x91   : > { %v470_v43 = vmul.f32 1.442695, %v469_v42 }
  0x93   : > { %732 = vpow2.f32 %v470_v43 }
  0x9d   : > { %v733_v44 = vpop.eup %732 }
  0x9e   : > { %v472_v45 = vadd.f32 1.0, %v733_v44 }
  0xa0   : > { %734 = vrcp.f32 %v472_v45 }
  0xaa   : > { %v735_v46 = vpop.eup %734 }
  0xab   : > { %474 = vst [vmem:[%s156_s30] sm:$0xff] %v735_v46 }
  0xac   : > { %789 = shalt.err (!%p786_p7)
}
  0xad   : > { %s790_s11 = scalar_lea.hbm %s1292_s13, 128  ;;  %s794_s15 = scalar_lea.hbm %s1343_s2, 256 }
  0xae   : > { %p791_p9 = scmp.ne.s32.totalorder %s1292_s13, %s790_s11  ;;  %p795_p1 = scmp.lt.u32.totalorder %s1292_s13, %s1343_s2 }
  0xaf   : > { %p796_p4 = scmp.lt.u32.totalorder %s794_s15, %s790_s11  ;;  %p798_p11 = scmp.lt.u32.totalorder %s790_s11, %s1292_s13 }
  0xb0   : > { %p792_p10 = pnand %p791_p9, %p1351_p12 }
  0xb1   : > { %p797_p6 = por %p796_p4, %p795_p1 }
  0xb2   : > { %p793_p13 = pneg %p792_p10 }
  0xb3   : > { %p799_p0 = por %p798_p11, %p797_p6 }
  0xb5   : > { %p800_p3 = pnand %p799_p0, %p793_p13 }
  0xb7   : > { %803 = shalt.err (!%p800_p3)
}
  0xb8   : > { %669 = dma.vmem_to_hbm [thread:$0]  (%p1351_p12), %s1294_s7, 128, %s1292_s13, %s476_s16  }
  0xb9 PF: > { %s502_s27 = sand.u32 1, %s840_s19   ;;  %p1352_p8 = scmp.ne.s32.totalorder %s1348_s5, 0 }
  0xba   : > { %p1353_p2 = scmp.ge.s32.totalorder %s860_s24, 2  ;;  %s503_s28 = scalar_lea.sflag [#allocation6], %s502_s27 }
  0xbc   : > { %p676_p5 = pnand %p1353_p2, %p1352_p8 }
  0xbe   : > { %835 = dma.done.wait (!%p676_p5), %s503_s28, 128  }
  0xbf   : > { %837 = vsyncadd (!%p676_p5), %s503_s28, 4294967168  ;;  %s22_s24 = sadd.s32 1, %s860_s24   ;;  %s1354_s19 = smov %s844_s20 }
  0xc0   : > { %p19_p7 = scmp.ge.s32.totalorder %s22_s24, 4   ;;  %s1355_s20 = smov %s848_s21 }
  0xc1   : > { %s1356_s21 = smov %s950_s4  ;;  %s1357_s22 = smov %s856_s23 }
  0xc2   : > { %s1358_s23 = smov %s1360_s26  ;;  %21 = sbr.rel (!%p19_p7) target bundleno = 18 (0x12), region = 71 }
  0xc9   :  { %508 = vsyncpa [#allocation5], 1 }
  0xca   :  { %510 = vsyncpa [#allocation5 + $0x1], 1 }
  0xcb   :  { %511 = vsyncpa [#allocation6], 1 }
  0xcc   :  { %513 = vsyncpa [#allocation6 + $0x1], 1 }

</bundles_post_ra>
